<compile_context>
chip_gen: v7x
topology: tpu7x:2x2x1
jax: 0.10.0
libtpu: 0.0.40
codegen_flags: <defaults>
</compile_context>

<pallas_src>
import jax
import jax.numpy as jnp
from jax import lax
from jax.experimental import pallas as pl
from jax.experimental.pallas import tpu as pltpu


_LANE = 128


def _round_up(x, m):
    return ((x + m - 1) // m) * m


def _vmem_limit_bytes():
    """Generation-tuned scoped-VMEM cap: ~3/4 of physical VMEM, max 96 MiB.
    v5e/v6e (128 MiB) -> 96 MiB; v7x (64 MiB) -> 48 MiB; unknown -> 48 MiB."""
    phys = 64 * 1024 * 1024
    try:
        phys = int(pltpu.get_tpu_info().vmem_capacity_bytes)
    except Exception:
        pass
    return min(phys * 3 // 4, 96 * 1024 * 1024)


def _pick_tile(dim, cap, mult):
    """Full dim if it fits under `cap`, else the largest multiple of `mult`
    <= cap that divides `dim` (keeps BlockSpec (8,128) rules satisfied)."""
    if dim <= cap:
        return dim
    t = (min(cap, dim) // mult) * mult
    while t >= mult:
        if dim % t == 0:
            return t
        t -= mult
    # TODO(synk): pad awkward lane dims (no friendly divisor) instead of one
    # full block; only reachable for huge prime-ish N.
    return dim


def _plan_row_tiling(M, N, itemsize, x_tile_budget):
    """Pick (n_cores, tm, Mp): tm is a multiple of 128 in [256, 1024] (floor
    amortizes the per-step MXU reload of the resident p), n_cores=2 gives a
    leading parallel axis (megacore on v7x, plain loop on v5e/v6e), and
    Mp = padded row count divisible by n_cores * tm."""
    if M <= 2 * _LANE:
        tm = _round_up(M, 8)           # single tile == full (padded) extent
        return 1, tm, tm
    cap_rows = max(256, x_tile_budget // max(1, itemsize * N))
    tm = int(max(256, min(1024, cap_rows)))
    tm = max(_LANE, (tm // _LANE) * _LANE)
    n_cores = 2
    per_core = _round_up(pl.cdiv(M, n_cores), _LANE)
    tm = min(tm, per_core)
    Mp = _round_up(M, n_cores * tm)
    return n_cores, tm, Mp


# ----------------------------------------------------------------------------
# Kernels
# ----------------------------------------------------------------------------
def _power_iter_mid_kernel(x_ref, p_ref, ptn_ref):
    """Non-final power-iteration step on one row tile of x.

    x_ref   : (tm, N) row tile of x (streamed), compute dtype
    p_ref   : (N,  r) p (resident, constant block across the grid)
    ptn_ref : (r,  N) accumulator for p_new^T = q^T @ x (lane-dense)
    """
    @pl.when(pl.program_id(1) == 0)
    def _init():
        ptn_ref[...] = jnp.zeros_like(ptn_ref)

    x = x_ref[...]
    # q_tile = x_tile @ p : canonical (m,k)x(k,n) MXU contraction, f32 accumulate.
    q = lax.dot_general(x, p_ref[...], (((1,), (0,)), ((), ())),
                        preferred_element_type=jnp.float32)            # (tm, r)
    # p_new^T += q_tile^T @ x_tile -> lane-dense (r, N) accumulator; the
    # transpose burden falls on the tiny (tm, r) operand, never on x.
    ptn_ref[...] += lax.dot_general(q.astype(x.dtype), x,
                                    (((0,), (0,)), ((), ())),
                                    preferred_element_type=jnp.float32)


def _power_iter_last_kernel(x_ref, p_ref, q_ref, ptn_ref):
    """Final power-iteration step: also emits q (consumed by CholeskyQR2 and the
    output matmul).  The (r, r) gram is computed outside from q (tiny)."""
    @pl.when(pl.program_id(1) == 0)
    def _init():
        ptn_ref[...] = jnp.zeros_like(ptn_ref)

    x = x_ref[...]
    q = lax.dot_general(x, p_ref[...], (((1,), (0,)), ((), ())),
                        preferred_element_type=jnp.float32)            # (tm, r)
    q_ref[...] = q
    ptn_ref[...] += lax.dot_general(q.astype(x.dtype), x,
                                    (((0,), (0,)), ((), ())),
                                    preferred_element_type=jnp.float32)


def _low_rank_kernel(q_ref, pt_ref, o_ref):
    # out_tile = q_tile @ p^T_tile : (tm, r) @ (r, tn) MXU matmul with
    # lane-dense (tm, tn) stores.
    o_ref[...] = lax.dot_general(q_ref[...], pt_ref[...],
                                 (((1,), (0,)), ((), ())),
                                 preferred_element_type=jnp.float32
                                 ).astype(o_ref.dtype)


# ----------------------------------------------------------------------------
# Wrappers
# ----------------------------------------------------------------------------
def _power_iteration(x_pad, p, n_cores, tm, emit_q, vmem_limit):
    """One fused sweep over x (padded to Mp rows).

    Returns (q or None, p_new^T) with per-core partial accumulators summed."""
    Mp, N = x_pad.shape
    r = p.shape[1]
    steps = Mp // (n_cores * tm)
    grid = (n_cores, steps)
    in_specs = [
        pl.BlockSpec((tm, N), lambda c, i: (c * steps + i, 0)),   # stream x rows
        pl.BlockSpec((N, r), lambda c, i: (0, 0)),                # resident p
    ]
    ptn_spec = pl.BlockSpec((None, r, N), lambda c, i: (c, 0, 0))  # per-core slab
    ptn_shape = jax.ShapeDtypeStruct((n_cores, r, N), jnp.float32)
    cparams = pltpu.CompilerParams(
        dimension_semantics=("parallel", "arbitrary"),
        vmem_limit_bytes=vmem_limit)

    if emit_q:
        q, ptn = pl.pallas_call(
            _power_iter_last_kernel,
            grid=grid,
            in_specs=in_specs,
            out_specs=(pl.BlockSpec((tm, r), lambda c, i: (c * steps + i, 0)),
                       ptn_spec),
            out_shape=(jax.ShapeDtypeStruct((Mp, r), jnp.float32), ptn_shape),
            compiler_params=cparams,
        )(x_pad, p)
    else:
        ptn = pl.pallas_call(
            _power_iter_mid_kernel,
            grid=grid,
            in_specs=in_specs,
            out_specs=ptn_spec,
            out_shape=ptn_shape,
            compiler_params=cparams,
        )(x_pad, p)
        q = None
    return q, jnp.sum(ptn, axis=0)          # combine per-core partials (tiny)


def _low_rank_matmul(q, pt, out_dtype, vmem_limit):
    """out = q @ p^T, tiled over (Mp, N) with lane-dense output stores."""
    Mp, r = q.shape
    N = pt.shape[1]
    tm_cap = 1024 if vmem_limit >= 80 * 1024 * 1024 else 512   # v5e/v6e vs v7x
    tm = _pick_tile(Mp, tm_cap, 8)
    tn = _pick_tile(N, 2048, _LANE)
    grid = (Mp // tm, N // tn)
    return pl.pallas_call(
        _low_rank_kernel,
        grid=grid,
        in_specs=[
            pl.BlockSpec((tm, r), lambda i, j: (i, 0)),
            pl.BlockSpec((r, tn), lambda i, j: (0, j)),
        ],
        out_specs=pl.BlockSpec((tm, tn), lambda i, j: (i, j)),
        out_shape=jax.ShapeDtypeStruct((Mp, N), out_dtype),
        compiler_params=pltpu.CompilerParams(
            dimension_semantics=("parallel", "parallel"),
            vmem_limit_bytes=vmem_limit),
    )(q, pt)


def _cholesky_qr2(q, ptn):
    """CholeskyQR2 orthonormalisation of q (Mp, r), with ptn = q^T x transformed
    consistently:  Q = q R^-1  and  x^T Q == (R^-T (q^T x))^T,  so the last
    power iteration stays inside the single fused pass over x.  The second pass
    fixes plain CholeskyQR's squared conditioning; a tiny jitter keeps the
    factorization finite for (near-)rank-deficient q."""
    def step(q, ptn):
        gram = jnp.dot(q.T, q, precision=lax.Precision.HIGHEST)     # (r, r), tiny
        r = gram.shape[0]
        jitter = 1e-6 * (jnp.trace(gram) / r) + 1e-30
        ell = jnp.linalg.cholesky(gram + jitter * jnp.eye(r, dtype=gram.dtype))
        q = jax.scipy.linalg.solve_triangular(ell, q.T, lower=True).T
        ptn = jax.scipy.linalg.solve_triangular(ell, ptn, lower=True)
        return q, ptn

    q, ptn = step(q, ptn)
    q, ptn = step(q, ptn)
    return q, ptn


def power_svd_forward(x, p_buffer, q_buffer, num_iter, compute_dtype=jnp.bfloat16):
    """Replicates PowerSVD.forward (PowerSVDLayer).

    x: (M, N); p_buffer: (N, r); q_buffer: (M, r).  q_buffer is only read when
    num_iter == 0 (the reference overwrites it before first use otherwise).

    compute_dtype=bfloat16 (default) runs the x-streaming MXU dots with bf16
    operands and f32 accumulation (half the HBM traffic, no f32 MXU emulation).
    Pass jnp.float32 for reference-strength numerics.
    """
    M, N = x.shape
    out_dtype = x.dtype
    compute_dtype = jnp.dtype(compute_dtype)
    vmem_limit = _vmem_limit_bytes()

    if num_iter == 0:
        out = _low_rank_matmul(q_buffer.astype(compute_dtype),
                               jnp.transpose(p_buffer).astype(compute_dtype),
                               out_dtype, vmem_limit)
        return out

    x_tile_budget = vmem_limit // 8
    n_cores, tm, Mp = _plan_row_tiling(M, N, compute_dtype.itemsize, x_tile_budget)
    x_c = x.astype(compute_dtype)
    if Mp != M:
        # Zero rows contribute exact zeros to q, q^T x and q^T q; padded output
        # rows are sliced off at the end.  Done ONCE, outside the iteration loop.
        x_c = jnp.pad(x_c, ((0, Mp - M), (0, 0)))

    p = p_buffer.astype(jnp.float32)                 # (N, r) carried in f32
    q = None
    pt = None
    for i in range(num_iter):
        last = i == num_iter - 1
        if last:
            # TODO(synk): QR has no Pallas primitive; the tiny (N, r) Householder
            # QR of p runs as plain JAX between kernels.
            p = jnp.linalg.qr(p, mode="reduced")[0]
        q, ptn = _power_iteration(x_c, p.astype(compute_dtype), n_cores, tm,
                                  emit_q=last, vmem_limit=vmem_limit)
        if last:
            q, pt = _cholesky_qr2(q, ptn)
        else:
            p = jnp.transpose(ptn)                   # (N, r) for the next sweep

    out = _low_rank_matmul(q.astype(compute_dtype), pt.astype(compute_dtype),
                           out_dtype, vmem_limit)
    return out[:M]


# ----------------------------------------------------------------------------
# Self-test
# ----------------------------------------------------------------------------
if __name__ == "__main__":
    def ref_forward(x, p, it):
        # Pure-JAX mirror of the PyTorch module (Householder QR, f32 'highest').
        with jax.default_matmul_precision("highest"):
            q = None
            for i in range(it):
                if i == it - 1:
                    p = jnp.linalg.qr(p, mode="reduced")[0]
                q = x @ p
                if i == it - 1:
                    q = jnp.linalg.qr(q, mode="reduced")[0]
                p = x.T @ q
            return q @ p.T

    def mimic_forward(x, p, it, compute_dtype):
        # Mirror of the kernel pipeline (same casts / CholeskyQR2): the right
        # reference for the bf16 fast path, where agreement with the f32
        # Householder reference is inherently loose.
        x_c = x.astype(compute_dtype)
        p = p.astype(jnp.float32)
        q = pt = None
        for i in range(it):
            last = i == it - 1
            if last:
                p = jnp.linalg.qr(p, mode="reduced")[0]
            q = lax.dot_general(x_c, p.astype(compute_dtype),
                                (((1,), (0,)), ((), ())),
                                preferred_element_type=jnp.float32)
            ptn = lax.dot_general(q.astype(compute_dtype), x_c,
                                  (((0,), (0,)), ((), ())),
                                  preferred_element_type=jnp.float32)
            if last:
                q, pt = _cholesky_qr2(q, ptn)
            else:
                p = jnp.transpose(ptn)
        out = lax.dot_general(q.astype(compute_dtype), pt.astype(compute_dtype),
                              (((1,), (0,)), ((), ())),
                              preferred_element_type=jnp.float32)
        return out.astype(x.dtype)

    def run_case(M, N, rank, num_iter, compute_dtype, rel_tol, use_mimic):
        kx, kp, kq = jax.random.split(jax.random.PRNGKey(0), 3)
        x = jax.random.normal(kx, (M, N), dtype=jnp.float32)
        p_buffer = jax.random.normal(kp, (N, rank), dtype=jnp.float32)
        q_buffer = jax.random.normal(kq, (M, rank), dtype=jnp.float32)

        out = jax.block_until_ready(
            power_svd_forward(x, p_buffer, q_buffer, num_iter,
                              compute_dtype=compute_dtype))
        assert out.shape == (M, N) and out.dtype == jnp.float32

        ref = (mimic_forward(x, p_buffer, num_iter, compute_dtype) if use_mimic
               else ref_forward(x, p_buffer, num_iter))
        err = float(jnp.max(jnp.abs(out - ref)))
        tol = rel_tol * max(1.0, float(jnp.max(jnp.abs(ref))))
        assert err <= tol, (M, N, rank, num_iter, str(compute_dtype), err, tol)

    # Small shape matching the torch module: shape=(16, 32) ->
    #   p_buffer (16, 4), q_buffer (32, 4), input x (32, 16).
    run_case(32, 16, 4, 2, jnp.float32, 1e-3, False)
    run_case(32, 16, 4, 1, jnp.float32, 1e-3, False)
    # Ragged row count: exercises zero-padding of x and the 2-core split.
    run_case(300, 160, 4, 2, jnp.float32, 1e-3, False)
    # Larger f32 case: row-tiled grid, per-core partial accumulators, mid + last
    # kernel variants, and the tiled output matmul.
    run_case(4096, 1024, 4, 3, jnp.float32, 1e-3, False)
    # Default bf16 fast path, checked against a cast-identical JAX mirror.
    run_case(1024, 512, 8, 2, jnp.bfloat16, 2e-3, True)

    print("KERNEL_OK")
</pallas_src>

<mosaic_0001>
module attributes {stable_mosaic.version = 11 : i64} {
  func.func @_power_iter_mid_kernel(%arg0: i32, %arg1: i32, %arg2: memref<32x16xf32, #tpu.memory_space<vmem>>, %arg3: memref<16x4xf32, #tpu.memory_space<vmem>>, %arg4: memref<1x4x16xf32, #tpu.memory_space<vmem>>) attributes {dimension_semantics = [#tpu.dimension_semantics<parallel>, #tpu.dimension_semantics<arbitrary>], iteration_bounds = array<i64: 1, 1>, scalar_prefetch = 0 : i64, scratch_operands = 0 : i64, tpu.core_type = #tpu.core_type<tc>, window_params = [{transform_indices = @transform_0, window_bounds = array<i64: 32, 16>}, {pipeline_mode = #tpu.pipeline_mode<synchronous>, transform_indices = @transform_1, window_bounds = array<i64: 16, 4>}, {transform_indices = @transform_2, window_bounds = array<i64: 1, 4, 16>}]} {
    %c0_i32 = arith.constant 0 : i32
    %0 = arith.cmpi eq, %arg1, %c0_i32 : i32
    %1 = arith.extui %0 : i1 to i32
    %c0_i32_0 = arith.constant 0 : i32
    %2 = arith.cmpi ne, %1, %c0_i32_0 : i32
    scf.if %2 {
      %cst_11 = arith.constant 0.000000e+00 : f32
      %13 = vector.broadcast %cst_11 : f32 to vector<4x16xf32>
      %c0_12 = arith.constant 0 : index
      %c0_13 = arith.constant 0 : index
      %c0_14 = arith.constant 0 : index
      %14 = vector.load %arg4[%c0_12, %c0_13, %c0_14] : memref<1x4x16xf32, #tpu.memory_space<vmem>>, vector<1x4x16xf32>
      %15 = vector.shape_cast %14 : vector<1x4x16xf32> to vector<4x16xf32>
      %16 = vector.shape_cast %13 : vector<4x16xf32> to vector<1x4x16xf32>
      tpu.vector_store %arg4[%c0_12, %c0_13, %c0_14], %16 {strides = array<i32>} : memref<1x4x16xf32, #tpu.memory_space<vmem>>, vector<1x4x16xf32>,
    } else {
    }
    %c0 = arith.constant 0 : index
    %c0_1 = arith.constant 0 : index
    %3 = vector.load %arg2[%c0, %c0_1] : memref<32x16xf32, #tpu.memory_space<vmem>>, vector<32x16xf32>
    %c0_2 = arith.constant 0 : index
    %c0_3 = arith.constant 0 : index
    %4 = vector.load %arg3[%c0_2, %c0_3] : memref<16x4xf32, #tpu.memory_space<vmem>>, vector<16x4xf32>
    %cst = arith.constant dense<0.000000e+00> : vector<32x4xf32>
    %5 = tpu.matmul %3, %4, %cst {dimension_numbers = #tpu.dot_dimension_numbers<[1], [0], [0], [1], [0, 0, 1, 1], [], []>} : vector<32x16xf32>, vector<16x4xf32>, vector<32x4xf32> -> vector<32x4xf32>
    %c0_4 = arith.constant 0 : index
    %c0_5 = arith.constant 0 : index
    %c0_6 = arith.constant 0 : index
    %6 = vector.load %arg4[%c0_4, %c0_5, %c0_6] : memref<1x4x16xf32, #tpu.memory_space<vmem>>, vector<1x4x16xf32>
    %7 = vector.shape_cast %6 : vector<1x4x16xf32> to vector<4x16xf32>
    %cst_7 = arith.constant dense<0.000000e+00> : vector<4x16xf32>
    %8 = tpu.matmul %5, %3, %cst_7 {dimension_numbers = #tpu.dot_dimension_numbers<[0], [0], [1], [1], [0, 1, 1, 1], [], []>} : vector<32x4xf32>, vector<32x16xf32>, vector<4x16xf32> -> vector<4x16xf32>
    %9 = arith.addf %7, %8 : vector<4x16xf32>
    %c0_8 = arith.constant 0 : index
    %c0_9 = arith.constant 0 : index
    %c0_10 = arith.constant 0 : index
    %10 = vector.load %arg4[%c0_8, %c0_9, %c0_10] : memref<1x4x16xf32, #tpu.memory_space<vmem>>, vector<1x4x16xf32>
    %11 = vector.shape_cast %10 : vector<1x4x16xf32> to vector<4x16xf32>
    %12 = vector.shape_cast %9 : vector<4x16xf32> to vector<1x4x16xf32>
    tpu.vector_store %arg4[%c0_8, %c0_9, %c0_10], %12 {strides = array<i32>} : memref<1x4x16xf32, #tpu.memory_space<vmem>>, vector<1x4x16xf32>,
    return
  }
  func.func @transform_0(%arg0: i32, %arg1: i32) -> (i32, i32) {
    %c1_i32 = arith.constant 1 : i32
    %0 = arith.muli %arg0, %c1_i32 : i32
    %1 = arith.addi %0, %arg1 : i32
    %c0_i32 = arith.constant 0 : i32
    %c0_i32_0 = arith.constant 0 : i32
    return %1, %c0_i32 : i32, i32
  }
  func.func @transform_1(%arg0: i32, %arg1: i32) -> (i32, i32) {
    %c0_i32 = arith.constant 0 : i32
    %c0_i32_0 = arith.constant 0 : i32
    %c0_i32_1 = arith.constant 0 : i32
    return %c0_i32, %c0_i32_0 : i32, i32
  }
  func.func @transform_2(%arg0: i32, %arg1: i32) -> (i32, i32, i32) {
    %c0_i32 = arith.constant 0 : i32
    %c0_i32_0 = arith.constant 0 : i32
    %c0_i32_1 = arith.constant 0 : i32
    return %arg0, %c0_i32, %c0_i32_0 : i32, i32, i32
  }
}

</mosaic_0001>

<bundles_post_ra>
// kernel: tpu_custom_call.1
= control target key start
LH: loop header
LB: loop body
LE: loop exit
PB: predicated region body
PF: predicated region fallthrough
CT: control target
= control target key end

     0   :  { %vm46_vm0 = vcmask 130048   ;;  %s400_s0 = inlined_call_operand.vmem [shape: f32[32,16], index: 0, kind: input, shape index: {}]   ;;  %s401_s1 = inlined_call_operand.vmem [shape: f32[16,4], index: 1, kind: input, shape index: {}]   ;;  %s402_s2 = inlined_call_operand.hbm [shape: f32[1,4,16], index: 2, kind: output, shape index: {}]  }
   0x1   :  { %v44_v0 = vld [vmem:[%s401_s1] sm:$0xff]  ;;  %v45_v1 = vld [vmem:[%s401_s1 + $0x8] sm:$0xff] }
   0x2   :  { %v40_v2 = vld [vmem:[%s400_s0] sm:$0xff]  ;;  %v311_v3 = vpack.c.bf16 %v45_v1, %v44_v0 }
   0x3   :  { %294 = vmatprep.mubr.msk.f32.mxu0 %vm46_vm0, %v40_v2 }
   0x4   :  { %7 = vsyncpa [#allocation3], 0  ;;  %312 = vmatprep.subr.bf16.mxu0 %v311_v3  ;;  %v41_v4 = vld [vmem:[%s400_s0 + $0x8] sm:$0xff]  ;;  %v42_v5 = vld [vmem:[%s400_s0 + $0x10] sm:$0xff]  ;;  %v349_v8 = vmov 0.0|0.0   ;;  %vm38_vm1 = vcmask 125952  }
   0x5   :  { %314 = vmatpush3.bf16.msra.mxu0 %v311_v3  ;;  %v43_v6 = vld [vmem:[%s400_s0 + $0x18] sm:$0xff]  ;;  %v316_v7 = vpack.c.bf16 %v41_v4, %v40_v2  ;;  %315 = vmatprep.subr.bf16.mxu1 %v349_v8  ;;  %vm350_vm2 = vmmov 0   ;;  %v351_v12 = vmov 0.0   ;;  %vm177_vm3 = vcmask 261120   ;;  %s352_s0 = smov [#allocation2]  }
   0x6   :  { %v319_v9 = vpack.c.bf16 %v43_v6, %v42_v5  ;;  %308 = vmatprep.mubr.msk.f32.mxu1 %vm350_vm2, %v351_v12  ;;  %39 = vst.msk [vmem:[#allocation2] sm:$0xf] %vm38_vm1, %v351_v12  ;;  %s260_s20 = sshll.u32 %s352_s0, 4  ;;  %s261_s20 = int_to_ptr.vmem [resolvable:$true] %s260_s20 }
   0x7   :  { %317 = vmatpush3.bf16.msra.mxu1 %v316_v7  ;;  %s325_s21 = scalar_lea.vmem %s261_s20, 64  ;;  %p330_p1 = scmp.lt.s32.totalorder %s261_s20, %s261_s20 }
   0x8   :  { %295 = vmatmul.mubr.msk.f32.vlgmr.msra.gmra.mrb[0].mxu0 %vm46_vm0, %v41_v4  ;;  %318 = vmatprep.subr.bf16.mxu1 %v349_v8  ;;  %p326_p0 = scmp.ne.s32.totalorder %s261_s20, %s325_s21  ;;  %p331_p2 = scmp.lt.s32.totalorder %s325_s21, %s325_s21 }
   0x9   :  { %297 = vmatprep.mubr.msk.f32.mxu0 %vm46_vm0, %v42_v5 }
   0xa   :  { %p332_p3 = por %p331_p2, %p330_p1 }
   0xb   :  { %320 = vmatpush3.bf16.msra.mxu1 %v319_v9 }
   0xc   :  { %298 = vmatmul.mubr.msk.f32.gmra.mrb[2].mxu0 %vm46_vm0, %v43_v6  ;;  %p333_p4 = pnand %p332_p3, %p326_p0 }
   0xd   :  { %v144_v16 = vld [vmem:[#allocation2] sm:$0xf] }
  0xdb   :  { %v296_v10 = vpop.f32.mrb[0].mxu0 }
  0xdc   :  { %v125_v11 = vpop.f32.mrb[1].mxu0 }
  0xdd   :  { %145 = vxpose.xlu0.b32.start [1/4] (short) (narrow) %v125_v11, 8 }
  0xdf   :  { %v299_v13 = vpop.f32.mrb[2].mxu0 }
  0xe0   :  { %v135_v14 = vpop.f32.mrb[3].mxu0 }
  0xe1   :  { %146 = vxpose.xlu0.b32.cont [2/4] (short) (narrow) %v296_v10, 8 }
  0xe5   :  { %147 = vxpose.xlu0.b32.cont [3/4] (short) (narrow) %v135_v14, 8 }
  0xe9   :  { %148 = vxpose.xlu0.b32.end [4/4] (short) (narrow) %v299_v13, 8 }
 0x15d   :  { %v161_v15 = vpop.trf.xlu0 }
 0x15e   :  { %309 = vmatmul.mubr.msk.f32.vlgmr.msra.gmra.mrb[0].mxu1 %vm177_vm3, %v161_v15 }
 0x231   :  { %v247_v17 = vpop.f32.mrb[0].mxu1 }
 0x232   :  { %v251_v18 = vadd.f32 %v247_v17, %v144_v16  ;;  %v310_v19 = vpop.f32.mrb[1].mxu1 }
 0x234   :  { %253 = vst.msk [vmem:[#allocation2] sm:$0xf] %vm38_vm1, %v251_v18 }
 0x235   :  { %336 = shalt.err (!%p333_p4)
}
 0x236   :  { %s337_s24 = scalar_lea.hbm %s402_s2, 64 }
 0x237   :  { %p338_p5 = scmp.ne.s32.totalorder %s402_s2, %s337_s24  ;;  %p341_p6 = scmp.lt.u32.totalorder %s337_s24, %s402_s2 }
 0x239   :  { %p343_p7 = pnand %p341_p6, %p338_p5 }
 0x23b   :  { %346 = shalt.err (!%p343_p7)
}
 0x23c   :  { %263 = dma.vmem_to_hbm [thread:$0]  %s261_s20, 64, %s402_s2, [#allocation3]  }
 0x23d   :  { %347 = dma.done.wait [#allocation3], 64  }
 0x23e   :  { %348 = vsyncadd [#allocation3], 4294967232 }
 0x23f   :  { %267 = vsyncpa [#allocation3], 1 }

</bundles_post_ra>
